<compile_context>
chip_gen: v7x
topology: tpu7x:2x2x1
jax: 0.10.0
libtpu: 0.0.40
codegen_flags: <defaults>
</compile_context>

<pallas_src>
import jax
import jax.numpy as jnp
from jax.experimental import pallas as pl
from jax.experimental.pallas import tpu as pltpu


def _time_shift_kernel(shift_ref, x_ref, o_ref):
    # Block is (block_b, T); rotate along the time (lane) axis on the XLU.
    # shift_ref lives in SMEM (scalar prefetch) -> dynamic rotate, no
    # recompile per shift value.  pltpu.roll matches jnp.roll/torch.roll
    # semantics: out[..., i] = x[..., (i - shift) mod T].
    o_ref[...] = pltpu.roll(x_ref[...], shift_ref[0], axis=1)


def _round_down8(x):
    return (x // 8) * 8


def _choose_block_b(b, t, itemsize, vmem_budget_bytes=8 * 1024 * 1024):
    """Rows per block.

    Always a multiple of 8 (dense sublanes).  Sized so the 4 resident copies
    (input + output, each double-buffered by the Pallas pipeline) fit the
    budget; 2 MiB-per-buffer blocks already reach ~85% of HBM roofline.
    Guarantees >= 2 grid steps when b >= 16 so the "parallel" axis can shard
    across v7x's two TensorCores.
    """
    bytes_per_row = t * itemsize
    rows = vmem_budget_bytes // (4 * bytes_per_row)
    rows = max(8, _round_down8(rows))
    # Never exceed the (sublane-rounded) batch; partial last block is padded.
    rows = min(rows, max(8, _round_down8(b)))
    # Megacore: keep at least 2 grid steps when the batch is large enough.
    if b >= 16:
        rows = min(rows, max(8, _round_down8(b // 2)))
    return rows


def _vmem_limit_bytes(block_b, t, itemsize):
    """Explicit scoped-VMEM request when the 8-row floor exceeds the budget."""
    working_set = 4 * block_b * t * itemsize  # in + out, double-buffered
    if working_set <= 12 * 1024 * 1024:
        return None  # comfortably inside every generation's scoped default
    # Very long T: request the working set explicitly (plus headroom) so the
    # pipeline keeps double-buffering instead of failing at the default limit.
    return min(working_set + (2 << 20), 100 * 1024 * 1024)


def time_shift_value(signal, *, sample_rate, shift):
    """Pallas equivalent of TimeShiftValue(sample_rate, shift).forward(signal).

    `signal` is the (batch, time) array the transform operates on.
    """
    num_shifts = int(shift * sample_rate)   # same truncation as the torch module
    b, t = signal.shape
    s = num_shifts % t                      # Python modulo -> always in [0, t)

    if s == 0:
        # No-op roll: skip the kernel launch (and the HBM round-trip) entirely.
        return signal

    block_b = _choose_block_b(b, t, signal.dtype.itemsize)
    vmem_limit = _vmem_limit_bytes(block_b, t, signal.dtype.itemsize)

    grid_spec = pltpu.PrefetchScalarGridSpec(
        num_scalar_prefetch=1,
        grid=(pl.cdiv(b, block_b),),
        # index_maps receive the scalar-prefetch ref as a trailing arg.
        in_specs=[pl.BlockSpec((block_b, t), lambda i, shift_ref: (i, 0))],
        out_specs=pl.BlockSpec((block_b, t), lambda i, shift_ref: (i, 0)),
    )

    return pl.pallas_call(
        _time_shift_kernel,
        out_shape=jax.ShapeDtypeStruct((b, t), signal.dtype),
        grid_spec=grid_spec,
        # Input index 1 (after the prefetched scalar) aliases output 0: rolls
        # in place when the caller donates the signal buffer.
        input_output_aliases={1: 0},
        compiler_params=pltpu.CompilerParams(
            dimension_semantics=("parallel",),
            vmem_limit_bytes=vmem_limit,
        ),
    )(jnp.asarray([s], dtype=jnp.int32), signal)


if __name__ == "__main__":
    k1, k2, k3 = jax.random.split(jax.random.PRNGKey(0), 3)

    # Case 1: batch multiple of 8 (dense sublanes), moderate positive shift.
    sig1 = jax.random.normal(k1, (8, 1024), dtype=jnp.float32)
    out1 = jax.block_until_ready(
        time_shift_value(sig1, sample_rate=100.0, shift=0.25))   # 25 samples
    ref1 = jnp.roll(sig1, int(0.25 * 100.0), axis=1)
    assert out1.shape == sig1.shape and out1.dtype == sig1.dtype
    assert bool(jnp.allclose(out1, ref1)), "case 1 mismatch vs jnp.roll"

    # Case 2: non-multiple-of-8 batch (padded partial block) and a shift
    # larger than the signal length (mod-T wrap): 4000 % 1024 = 928.
    sig2 = jax.random.normal(k2, (4, 1024), dtype=jnp.float32)
    out2 = jax.block_until_ready(
        time_shift_value(sig2, sample_rate=16000.0, shift=0.25))
    ref2 = jnp.roll(sig2, int(0.25 * 16000.0), axis=1)
    assert bool(jnp.allclose(out2, ref2)), "case 2 mismatch vs jnp.roll"

    # Case 3: batch >= 16 -> at least 2 grid steps (megacore path), negative
    # shift.  Reuses the same compiled kernel as any other shift value for
    # this shape (shift is a runtime scalar).
    sig3 = jax.random.normal(k3, (16, 1024), dtype=jnp.float32)
    out3 = jax.block_until_ready(
        time_shift_value(sig3, sample_rate=100.0, shift=-0.5))   # -50 samples
    ref3 = jnp.roll(sig3, int(-0.5 * 100.0), axis=1)
    assert bool(jnp.allclose(out3, ref3)), "case 3 mismatch vs jnp.roll"

    # Case 4: zero effective shift -> wrapper fast path (no kernel launch).
    out4 = jax.block_until_ready(
        time_shift_value(sig1, sample_rate=100.0, shift=0.0))
    assert bool(jnp.allclose(out4, sig1)), "case 4 (no-op) mismatch"

    print("KERNEL_OK")
</pallas_src>

<mosaic_0001>
module attributes {stable_mosaic.version = 11 : i64} {
  func.func @_time_shift_kernel(%arg0: i32, %arg1: memref<1xi32, #tpu.memory_space<smem>>, %arg2: memref<8x1024xf32, #tpu.memory_space<vmem>>, %arg3: memref<8x1024xf32, #tpu.memory_space<vmem>>) attributes {dimension_semantics = [#tpu.dimension_semantics<parallel>], iteration_bounds = array<i64: 1>, scalar_prefetch = 1 : i64, scratch_operands = 0 : i64, tpu.core_type = #tpu.core_type<tc>, window_params = [{transform_indices = @transform_0, window_bounds = array<i64: 8, 1024>}, {transform_indices = @transform_1, window_bounds = array<i64: 8, 1024>}]} {
    %c0 = arith.constant 0 : index
    %c0_0 = arith.constant 0 : index
    %0 = vector.load %arg2[%c0, %c0_0] : memref<8x1024xf32, #tpu.memory_space<vmem>>, vector<8x1024xf32>
    %c0_1 = arith.constant 0 : index
    %1 = memref.load %arg1[%c0_1] : memref<1xi32, #tpu.memory_space<smem>>
    %2 = tpu.dynamic_rotate %0 by %1 dim 1 : vector<8x1024xf32>, i32 -> vector<8x1024xf32>
    %c0_2 = arith.constant 0 : index
    %c0_3 = arith.constant 0 : index
    %3 = vector.load %arg3[%c0_2, %c0_3] : memref<8x1024xf32, #tpu.memory_space<vmem>>, vector<8x1024xf32>
    tpu.vector_store %arg3[%c0_2, %c0_3], %2 {strides = array<i32>} : memref<8x1024xf32, #tpu.memory_space<vmem>>, vector<8x1024xf32>,
    return
  }
  func.func @transform_0(%arg0: i32, %arg1: memref<1xi32, #tpu.memory_space<smem>>) -> (i32, i32) {
    %c0_i32 = arith.constant 0 : i32
    %c0_i32_0 = arith.constant 0 : i32
    return %arg0, %c0_i32 : i32, i32
  }
  func.func @transform_1(%arg0: i32, %arg1: memref<1xi32, #tpu.memory_space<smem>>) -> (i32, i32) {
    %c0_i32 = arith.constant 0 : i32
    %c0_i32_0 = arith.constant 0 : i32
    return %arg0, %c0_i32 : i32, i32
  }
}

</mosaic_0001>

<bundles_post_ra>
// kernel: tpu_custom_call.1
= control target key start
LH: loop header
LB: loop body
LE: loop exit
PB: predicated region body
PF: predicated region fallthrough
CT: control target
= control target key end

     0   :  { %8 = vsyncpa [#allocation5], 0  ;;  %s257_s0 = inlined_call_operand.<no memory space> [shape: s32[1], index: 0, kind: input, shape index: {}]   ;;  %s258_s1 = inlined_call_operand.hbm [shape: f32[8,1024], index: 1, kind: input, shape index: {}, may-alias: {1,2}]   ;;  %s259_s2 = inlined_call_operand.hbm [shape: f32[8,1024], index: 2, kind: output, shape index: {}, may-alias: {1,2}]  }
   0x1   :  { %9 = vsyncpa [#allocation6], 0  ;;  %s169_s9 = smov [#allocation4]   ;;  %s121_s13 = scalar_lea.hbm %s258_s1, 1024 }
   0x2   :  { %s16_s10 = sshll.u32 %s169_s9, 4  ;;  %p122_p0 = scmp.ne.s32.totalorder %s258_s1, %s121_s13  ;;  %s17_s10 = int_to_ptr.vmem [resolvable:$true] %s16_s10 }
   0x3   :  { %p125_p1 = scmp.lt.u32.totalorder %s121_s13, %s258_s1 }
   0x5   :  { %p127_p2 = pnand %p125_p1, %p122_p0 }
   0x7   :  { %130 = shalt.err (!%p127_p2)
}
   0x8   :  { %s131_s18 = scalar_lea.vmem %s17_s10, 1024  ;;  %p136_p4 = scmp.lt.s32.totalorder %s17_s10, %s17_s10 }
   0x9   :  { %p132_p3 = scmp.ne.s32.totalorder %s17_s10, %s131_s18  ;;  %p137_p5 = scmp.lt.s32.totalorder %s131_s18, %s131_s18 }
   0xb   :  { %p138_p6 = por %p137_p5, %p136_p4 }
   0xd   :  { %p139_p7 = pnand %p138_p6, %p132_p3 }
   0xf   :  { %142 = shalt.err (!%p139_p7)
}
  0x10   :  { %19 = dma.hbm_to_vmem [thread:$0]  %s258_s1, 1024, %s17_s10, [#allocation5]  }
  0x11   :  { %165 = dma.done.wait [#allocation5], 1024  }
  0x12   :  { %166 = vsyncadd [#allocation5], 4294966272  ;;  %s32_s23 = sand.u32 1023, %s257_s0   ;;  %v25_v0 = vld [vmem:[#allocation4 + $0x10] sm:$0xff]  ;;  %v23_v1 = vld [vmem:[#allocation4] sm:$0xff]  ;;  %v52_v8 = vlaneseq  ;;  %s170_s27 = smov [#allocation7]  }
  0x13   :  { %s33_s24 = sand.u32 127, %s32_s23   ;;  %v26_v2 = vld [vmem:[#allocation4 + $0x18] sm:$0xff]  ;;  %v24_v3 = vld [vmem:[#allocation4 + $0x8] sm:$0xff]  ;;  %v27_v5 = vld [vmem:[#allocation4 + $0x20] sm:$0xff]  ;;  %s34_s1 = sshrl.u32 %s32_s23, 7 }
  0x14   :  { %39 = vrot.lane.b32.xlu1 %v25_v0, %s33_s24  ;;  %35 = vrot.lane.b32.xlu0 %v23_v1, %s33_s24  ;;  %v28_v4 = vld [vmem:[#allocation4 + $0x28] sm:$0xff]  ;;  %v30_v6 = vld [vmem:[#allocation4 + $0x38] sm:$0xff]  ;;  %v29_v7 = vld [vmem:[#allocation4 + $0x30] sm:$0xff]  ;;  %s63_s0 = sand.u32 1, %s34_s1  ;;  %v53_v9 = vand.u32 127, %v52_v8  ;;  %v51_v10 = vstv %s33_s24  ;;  %s74_s25 = sand.u32 2, %s34_s1 }
  0x15   :  { %v64_v13 = vstv %s63_s0  ;;  %v75_v20 = vstv %s74_s25  ;;  %s85_s26 = sand.u32 4, %s34_s1  ;;  %s110_s28 = sshll.u32 %s170_s27, 4  ;;  %s111_s28 = int_to_ptr.vmem [resolvable:$true] %s110_s28 }
  0x16   :  { %vm201_vm0 = vcmp.lt.s32.totalorder %v53_v9, %v51_v10  ;;  %vm65_vm1 = vcmp.ne.s32.totalorder %v64_v13, 0  ;;  %vm76_vm2 = vcmp.ne.s32.totalorder %v75_v20, 0  ;;  %v86_v27 = vstv %s85_s26  ;;  %s143_s29 = scalar_lea.vmem %s111_s28, 1024  ;;  %p148_p9 = scmp.lt.s32.totalorder %s111_s28, %s111_s28 }
  0x17   :  { %vm87_vm3 = vcmp.ne.s32.totalorder %v86_v27, 0  ;;  %p144_p8 = scmp.ne.s32.totalorder %s111_s28, %s143_s29  ;;  %p149_p10 = scmp.lt.s32.totalorder %s143_s29, %s143_s29 }
  0x18   :  { %41 = vrot.lane.b32.xlu1 %v26_v2, %s33_s24  ;;  %37 = vrot.lane.b32.xlu0 %v24_v3, %s33_s24 }
  0x19   :  { %p150_p11 = por %p149_p10, %p148_p9 }
  0x1b   :  { %p151_p12 = pnand %p150_p11, %p144_p8 }
  0x1c   :  { %45 = vrot.lane.b32.xlu1 %v28_v4, %s33_s24  ;;  %43 = vrot.lane.b32.xlu0 %v27_v5, %s33_s24 }
  0x20   :  { %49 = vrot.lane.b32.xlu1 %v30_v6, %s33_s24  ;;  %47 = vrot.lane.b32.xlu0 %v29_v7, %s33_s24 }
  0x86   :  { %v40_v11 = vpop.permute.xlu1 %39  ;;  %v36_v12 = vpop.permute.xlu0 %35 }
  0x8a   :  { %v42_v15 = vpop.permute.xlu1 %41  ;;  %v38_v16 = vpop.permute.xlu0 %37 }
  0x8b   :  { %v59_v17 = vsel %vm201_vm0, %v40_v11, %v42_v15  ;;  %v60_v18 = vsel %vm201_vm0, %v38_v16, %v40_v11  ;;  %v61_v19 = vsel %vm201_vm0, %v36_v12, %v38_v16 }
  0x8c   :  { %v68_v21 = vsel %vm65_vm1, %v61_v19, %v60_v18  ;;  %v69_v22 = vsel %vm65_vm1, %v60_v18, %v59_v17 }
  0x8e   :  { %v46_v23 = vpop.permute.xlu1 %45  ;;  %v44_v24 = vpop.permute.xlu0 %43 }
  0x8f   :  { %v57_v25 = vsel %vm201_vm0, %v44_v24, %v46_v23  ;;  %v58_v26 = vsel %vm201_vm0, %v42_v15, %v44_v24 }
  0x90   :  { %v70_v28 = vsel %vm65_vm1, %v59_v17, %v58_v26  ;;  %v71_v29 = vsel %vm65_vm1, %v58_v26, %v57_v25 }
  0x91   :  { %v81_v30 = vsel %vm76_vm2, %v68_v21, %v70_v28  ;;  %v82_v31 = vsel %vm76_vm2, %v69_v22, %v71_v29 }
  0x92   :  { %v50_v32 = vpop.permute.xlu1 %49  ;;  %v48_v33 = vpop.permute.xlu0 %47 }
  0x93   :  { %v62_v34 = vsel %vm201_vm0, %v50_v32, %v36_v12  ;;  %v55_v35 = vsel %vm201_vm0, %v48_v33, %v50_v32  ;;  %v56_v36 = vsel %vm201_vm0, %v46_v23, %v48_v33 }
  0x94   :  { %v67_v37 = vsel %vm65_vm1, %v62_v34, %v61_v19  ;;  %v66_v38 = vsel %vm65_vm1, %v55_v35, %v62_v34  ;;  %v72_v39 = vsel %vm65_vm1, %v57_v25, %v56_v36  ;;  %v73_v40 = vsel %vm65_vm1, %v56_v36, %v55_v35 }
  0x95   :  { %v80_v41 = vsel %vm76_vm2, %v67_v37, %v69_v22  ;;  %v77_v42 = vsel %vm76_vm2, %v72_v39, %v66_v38  ;;  %v78_v43 = vsel %vm76_vm2, %v73_v40, %v67_v37  ;;  %v79_v44 = vsel %vm76_vm2, %v66_v38, %v68_v21 }
  0x96   :  { %v83_v45 = vsel %vm76_vm2, %v70_v28, %v72_v39  ;;  %v84_v46 = vsel %vm76_vm2, %v71_v29, %v73_v40  ;;  %v88_v47 = vsel %vm87_vm3, %v81_v30, %v77_v42  ;;  %v89_v48 = vsel %vm87_vm3, %v82_v31, %v78_v43 }
  0x97   :  { %v90_v49 = vsel %vm87_vm3, %v83_v45, %v79_v44  ;;  %v91_v50 = vsel %vm87_vm3, %v84_v46, %v80_v41  ;;  %v92_v51 = vsel %vm87_vm3, %v77_v42, %v81_v30  ;;  %v93_v52 = vsel %vm87_vm3, %v78_v43, %v82_v31  ;;  %96 = vst [vmem:[#allocation7] sm:$0xff] %v88_v47 }
  0x98   :  { %97 = vst [vmem:[#allocation7 + $0x8] sm:$0xff] %v89_v48  ;;  %v94_v53 = vsel %vm87_vm3, %v79_v44, %v83_v45  ;;  %v95_v54 = vsel %vm87_vm3, %v80_v41, %v84_v46  ;;  %98 = vst [vmem:[#allocation7 + $0x10] sm:$0xff] %v90_v49 }
  0x99   :  { %99 = vst [vmem:[#allocation7 + $0x18] sm:$0xff] %v91_v50  ;;  %100 = vst [vmem:[#allocation7 + $0x20] sm:$0xff] %v92_v51 }
  0x9a   :  { %101 = vst [vmem:[#allocation7 + $0x28] sm:$0xff] %v93_v52  ;;  %102 = vst [vmem:[#allocation7 + $0x30] sm:$0xff] %v94_v53 }
  0x9b   :  { %103 = vst [vmem:[#allocation7 + $0x38] sm:$0xff] %v95_v54 }
  0x9c   :  { %154 = shalt.err (!%p151_p12)
}
  0x9d   :  { %s155_s4 = scalar_lea.hbm %s259_s2, 1024 }
  0x9e   :  { %p156_p13 = scmp.ne.s32.totalorder %s259_s2, %s155_s4  ;;  %p159_p0 = scmp.lt.u32.totalorder %s155_s4, %s259_s2 }
  0xa0   :  { %p161_p1 = pnand %p159_p0, %p156_p13 }
  0xa2   :  { %164 = shalt.err (!%p161_p1)
}
  0xa3   :  { %113 = dma.vmem_to_hbm [thread:$0]  %s111_s28, 1024, %s259_s2, [#allocation6]  }
  0xa4   :  { %167 = dma.done.wait [#allocation6], 1024  }
  0xa5   :  { %168 = vsyncadd [#allocation6], 4294966272 }
  0xa6   :  { %117 = vsyncpa [#allocation5], 1 }
  0xa7   :  { %118 = vsyncpa [#allocation6], 1 }

</bundles_post_ra>
